<compile_context>
chip_gen: v7x
topology: tpu7x:2x2x1
jax: 0.10.0
libtpu: 0.0.40
codegen_flags: <defaults>
</compile_context>

<pallas_src>
import functools
from typing import NamedTuple

import jax
import jax.numpy as jnp
from jax import lax
from jax.experimental import pallas as pl
from jax.experimental.pallas import tpu as pltpu

# k1..k4 / p1..p4 globals from the original file (assumed canonical values).
K_SIZES = (3, 5, 7, 9)
PADS = (1, 2, 3, 4)

_HALO_W = 128  # lane width of the halo block (minimum lane tile)


def _cdiv(a, b):
    return -(-a // b)


def _round_up(a, b):
    return _cdiv(a, b) * b


def _vmem_capacity_bytes():
    """Physical VMEM per core; conservative v7x fallback if the query fails."""
    try:
        return int(pltpu.get_tpu_info().vmem_capacity_bytes)
    except Exception:
        return 64 << 20


def _vmem_need(tL, Cs, Kc, C_out, in_bytes, out_bytes, mode):
    """Explicit VMEM budget for one grid step (incl. double buffers + f32 temps)."""
    need = 2 * Cs * tL * in_bytes            # main input tile, double-buffered
    need += 2 * Cs * _HALO_W * in_bytes      # halo tile, double-buffered
    need += 2 * C_out * Kc * in_bytes        # resident weights (count 2 bufs, safe)
    need += 2 * C_out * tL * out_bytes       # output tile, double-buffered
    need += C_out * tL * 4                   # f32 matmul result before the cast
    if mode == "im2col":
        need += Kc * tL * in_bytes           # im2col scratch (the dot RHS)
    else:
        need += C_out * tL * 4               # f32 accumulator scratch
        need += 2 * Cs * tL * in_bytes       # shifted-tap temporaries
    return need


# --------------------------------------------------------------------------- #
# Kernels
# --------------------------------------------------------------------------- #
def _im2col_kernel(x_ref, halo_ref, w_ref, o_ref, col_ref, *, K_s, Cs):
    """One (batch, L-tile) grid step, small-Cs path.

    x_ref    : (Cs, tL)         space-to-depth'd input tile (compute dtype)
    halo_ref : (Cs, 128)        the 128 columns immediately right of the tile
    w_ref    : (C_out, Kc)      folded + s2d-relaid weights (resident)
    o_ref    : (C_out, tL)      output tile, L on lanes (lane-dense stores)
    col_ref  : (Kc, tL)         persistent im2col scratch = dot RHS
    """
    tL = o_ref.shape[-1]
    # Tap 0: aligned full-width copy.
    col_ref[0:Cs, :] = x_ref[...]
    # Taps 1..K_s-1: write the shifted window directly into the scratch
    # (no concatenate temporaries; the tail q<=8 columns come from the halo).
    for q in range(1, K_s):
        r0 = q * Cs
        col_ref[r0:r0 + Cs, :tL - q] = x_ref[:, q:]
        col_ref[r0:r0 + Cs, tL - q:] = halo_ref[:, :q]
    o_ref[...] = jnp.dot(
        w_ref[...], col_ref[...], preferred_element_type=jnp.float32
    ).astype(o_ref.dtype)


def _tapdot_kernel(x_ref, halo_ref, w_ref, o_ref, acc_ref, *, K_s, Cs):
    """One (batch, L-tile) grid step, large-Cs path (Cs >= 128): no im2col,
    K_s accumulating MXU dots into an f32 scratch accumulator.

    w_ref : (K_s, C_out, Cs)    per-tap weight slabs (resident)
    """
    tL = o_ref.shape[-1]
    acc_ref[...] = jnp.dot(w_ref[0], x_ref[...], preferred_element_type=jnp.float32)
    for q in range(1, K_s):
        xq = jnp.concatenate([x_ref[:, q:], halo_ref[:, :q]], axis=1)
        acc_ref[...] += jnp.dot(w_ref[q], xq, preferred_element_type=jnp.float32)
    del tL
    o_ref[...] = acc_ref[...].astype(o_ref.dtype)


# --------------------------------------------------------------------------- #
# Weight fold (hoist out of the per-call path; call once per weight set)
# --------------------------------------------------------------------------- #
class FoldedWeights(NamedTuple):
    mode: str          # "im2col" or "tapdot"
    W: jax.Array       # (C_out, Kc) or (K_s, C_out, Cs)
    C_in: int
    C_out: int
    K: int
    K_s: int
    Cs: int
    Kc: int
    stride: int


def fold_branch_weights(weights, stride, *, compute_dtype=jnp.bfloat16):
    """Fold the 4 branch weights (C, C_in, k_b) into one relaid weight tensor."""
    s = int(stride)
    C, C_in = weights[0].shape[0], weights[0].shape[1]
    C_out = 4 * C
    for w, kb, pb in zip(weights, K_SIZES, PADS):
        assert w.shape == (C, C_in, kb), (w.shape, (C, C_in, kb))
        assert kb == 2 * pb + 1, "branches must share L_out (need k = 2p + 1)"

    p_max = max(PADS)
    K = max(p_max - pb + kb for kb, pb in zip(K_SIZES, PADS))   # = 9

    # TODO(synk): for MXU-bound configs (large C_in/C_out on v7x) the zero-tap
    # fold wastes ~33% of MXU FLOPs; could split back into per-branch dots.
    W = jnp.zeros((C_out, C_in, K), jnp.float32)
    for b, (w, kb, pb) in enumerate(zip(weights, K_SIZES, PADS)):
        off = p_max - pb
        W = W.at[b * C:(b + 1) * C, :, off:off + kb].set(w.astype(jnp.float32))

    K_s = _cdiv(K, s)          # taps after the stride fold
    Cs = s * C_in              # channels after the stride fold
    Kc = K_s * Cs              # im2col contraction depth

    # Relay to match the s2d input layout: column = q*Cs + r*C_in + ci.
    W_ext = jnp.zeros((C_out, C_in, K_s * s), jnp.float32).at[:, :, :K].set(W)
    W2 = jnp.transpose(
        W_ext.reshape(C_out, C_in, K_s, s), (0, 2, 3, 1)
    ).reshape(C_out, Kc)

    if Cs >= 128:
        mode = "tapdot"
        Wk = W2.reshape(C_out, K_s, Cs).transpose(1, 0, 2).astype(compute_dtype)
    else:
        mode = "im2col"
        Wk = W2.astype(compute_dtype)
    return FoldedWeights(mode, Wk, C_in, C_out, K, K_s, Cs, Kc, s)


# --------------------------------------------------------------------------- #
# Wrapper
# --------------------------------------------------------------------------- #
def branch_conv1d(x, weights=None, stride=1, *, folded=None, tile_l=1024,
                  compute_dtype=jnp.bfloat16, out_dtype=jnp.float32):
    """x: (N, C_in, L) NCL like PyTorch.  weights: list of 4 arrays (C, C_in, k_b).

    Returns (N, 4*C, L_out) in out_dtype, matching
    torch.cat([Conv1d(k_b, stride, p_b, bias=False)(x)], dim=1).
    Pass compute_dtype=jnp.float32 for f32 math (default bf16-in / f32-acc).
    """
    N, C_in, L = x.shape
    s = int(stride)
    if folded is None:
        assert weights is not None
        folded = fold_branch_weights(weights, s, compute_dtype=compute_dtype)
    assert folded.stride == s and folded.C_in == C_in

    C_out, K, K_s, Cs, Kc = folded.C_out, folded.K, folded.K_s, folded.Cs, folded.Kc
    p_max = max(PADS)
    L_out = (L + 2 * p_max - K) // s + 1

    in_bytes = jnp.dtype(compute_dtype).itemsize
    out_bytes = jnp.dtype(out_dtype).itemsize

    # ---- VMEM-budgeted L tiling (tL multiple of 128) -------------------------
    phys = _vmem_capacity_bytes()
    budget = min(int(phys * 3 // 4), 100 << 20)     # ~48 MiB on v7x, ~96 MiB v5e/v6e
    L128 = _round_up(max(L_out, 1), _HALO_W)
    tL = max(_HALO_W, (min(int(tile_l), L128) // _HALO_W) * _HALO_W)
    while tL > _HALO_W and _vmem_need(tL, Cs, Kc, C_out, in_bytes, out_bytes,
                                      folded.mode) > budget:
        tL -= _HALO_W
    n_tiles = _cdiv(L128, tL)
    L_out_pad = n_tiles * tL

    need = _vmem_need(tL, Cs, Kc, C_out, in_bytes, out_bytes, folded.mode)
    vmem_limit = int(min(max(2 * need, 32 << 20), budget))
    vmem_limit = max(vmem_limit, int(need) + (2 << 20))   # never below actual use
    vmem_limit = min(vmem_limit, 128 << 20)

    # ---- pad + space-to-depth (single fused wrapper-side XLA pass) -----------
    # TODO(synk): fuse the left pad / right edge into the kernel with edge-gated
    # halo blocks to remove this extra HBM pass entirely (review item #6).
    L_s_total = n_tiles * tL + _HALO_W          # main tiles + last tile's halo
    L_pad_total = L_s_total * s
    pad_r = L_pad_total - L - p_max
    assert pad_r >= 0
    x_c = x.astype(compute_dtype)
    x_p = jnp.pad(x_c, ((0, 0), (0, 0), (p_max, pad_r)))       # (N, C_in, L_pad)
    # (N, C_in, L_s, s) -> (N, s, C_in, L_s) -> (N, s*C_in, L_s); trivial for s=1.
    x_s2d = jnp.transpose(
        x_p.reshape(N, C_in, L_s_total, s), (0, 3, 1, 2)
    ).reshape(N, Cs, L_s_total)

    # ---- kernel / specs -------------------------------------------------------
    if folded.mode == "im2col":
        kernel = functools.partial(_im2col_kernel, K_s=K_s, Cs=Cs)
        w_spec = pl.BlockSpec((C_out, Kc), lambda n, i: (0, 0))
        scratch = [pltpu.VMEM((Kc, tL), compute_dtype)]
    else:
        kernel = functools.partial(_tapdot_kernel, K_s=K_s, Cs=Cs)
        w_spec = pl.BlockSpec((K_s, C_out, Cs), lambda n, i: (0, 0, 0))
        scratch = [pltpu.VMEM((C_out, tL), jnp.float32)]

    cost = pl.CostEstimate(
        flops=2 * N * C_out * Kc * L_out_pad,
        transcendentals=0,
        bytes_accessed=int(N * Cs * L_s_total * in_bytes
                           + folded.W.size * in_bytes
                           + N * C_out * L_out_pad * out_bytes),
    )

    out_pad = pl.pallas_call(
        kernel,
        out_shape=jax.ShapeDtypeStruct((N, C_out, L_out_pad), out_dtype),
        grid=(N, n_tiles),
        in_specs=[
            # main s2d tile: (Cs, tL) at lane offset i*tL
            pl.BlockSpec((None, Cs, tL), lambda n, i: (n, 0, i)),
            # 128-wide halo block starting at lane offset (i+1)*tL
            pl.BlockSpec((None, Cs, _HALO_W),
                         lambda n, i: (n, 0, (i + 1) * (tL // _HALO_W))),
            # folded weights, resident across all grid steps
            w_spec,
        ],
        out_specs=pl.BlockSpec((None, C_out, tL), lambda n, i: (n, 0, i)),
        scratch_shapes=scratch,
        compiler_params=pltpu.CompilerParams(
            dimension_semantics=("parallel", "parallel"),
            vmem_limit_bytes=vmem_limit,
        ),
        cost_estimate=cost,
    )(x_s2d, x_s2d, folded.W)

    return out_pad[:, :, :L_out]


# --------------------------------------------------------------------------- #
# Pure-JAX reference (PyTorch Conv1d semantics per branch + channel concat)
# --------------------------------------------------------------------------- #
def ref_branch_conv1d(x, weights, stride):
    outs = []
    for w, kb, pb in zip(weights, K_SIZES, PADS):
        o = lax.conv_general_dilated(
            x, w.astype(x.dtype),
            window_strides=(stride,), padding=[(pb, pb)],
            dimension_numbers=("NCH", "OIH", "NCH"),
            preferred_element_type=jnp.float32,
            precision=lax.Precision.HIGHEST)
        outs.append(o)
    return jnp.concatenate(outs, axis=1)


if __name__ == "__main__":
    # Small shapes consistent with the module: NCL input.
    N, C_in, L = 2, 4, 16
    out_channels = 8          # must be divisible by 4
    C = out_channels // 4

    key = jax.random.PRNGKey(0)
    kx, *kws = jax.random.split(key, 1 + 4)
    x = jax.random.normal(kx, (N, C_in, L), dtype=jnp.float32)

    # Deterministic weight init (kaiming-like scaling), shapes (C, C_in, k_b).
    weights = []
    for kw_key, kb in zip(kws, K_SIZES):
        scale = 1.0 / jnp.sqrt(jnp.float32(C_in * kb))
        weights.append(scale * jax.random.normal(kw_key, (C, C_in, kb), jnp.float32))

    for stride in (1, 2):
        # f32 compute path vs exact f32 reference.
        out = jax.block_until_ready(
            branch_conv1d(x, weights, stride, compute_dtype=jnp.float32))
        ref = jax.block_until_ready(ref_branch_conv1d(x, weights, stride))
        assert out.shape == ref.shape, (stride, out.shape, ref.shape)
        err = float(jnp.max(jnp.abs(out - ref)))
        assert err < 2e-2, (stride, err)

        # Default bf16-in / f32-acc path vs reference on the SAME bf16-cast inputs.
        out_bf = jax.block_until_ready(branch_conv1d(x, weights, stride))
        ref_bf = jax.block_until_ready(
            ref_branch_conv1d(x.astype(jnp.bfloat16),
                              [w.astype(jnp.bfloat16) for w in weights], stride))
        assert out_bf.shape == ref_bf.shape, (stride, out_bf.shape, ref_bf.shape)
        err_bf = float(jnp.max(jnp.abs(out_bf - ref_bf)))
        assert err_bf < 2e-2, (stride, err_bf)

    print("KERNEL_OK")
</pallas_src>

<mosaic_0001>
module attributes {stable_mosaic.version = 11 : i64} {
  func.func @_im2col_kernel(%arg0: i32, %arg1: i32, %arg2: memref<1x4x128xf32, #tpu.memory_space<vmem>>, %arg3: memref<1x4x128xf32, #tpu.memory_space<vmem>>, %arg4: memref<8x36xf32, #tpu.memory_space<vmem>>, %arg5: memref<1x8x128xf32, #tpu.memory_space<vmem>>, %arg6: memref<36x128xf32, #tpu.memory_space<vmem>>) attributes {dimension_semantics = [#tpu.dimension_semantics<parallel>, #tpu.dimension_semantics<parallel>], iteration_bounds = array<i64: 2, 1>, scalar_prefetch = 0 : i64, scratch_operands = 1 : i64, tpu.core_type = #tpu.core_type<tc>, window_params = [{transform_indices = @transform_0, window_bounds = array<i64: 1, 4, 128>}, {transform_indices = @transform_1, window_bounds = array<i64: 1, 4, 128>}, {pipeline_mode = #tpu.pipeline_mode<synchronous>, transform_indices = @transform_2, window_bounds = array<i64: 8, 36>}, {transform_indices = @transform_3, window_bounds = array<i64: 1, 8, 128>}]} {
    %c0 = arith.constant 0 : index
    %c0_0 = arith.constant 0 : index
    %c0_1 = arith.constant 0 : index
    %0 = vector.load %arg2[%c0, %c0_0, %c0_1] : memref<1x4x128xf32, #tpu.memory_space<vmem>>, vector<1x4x128xf32>
    %1 = vector.shape_cast %0 : vector<1x4x128xf32> to vector<4x128xf32>
    %c0_2 = arith.constant 0 : index
    %c0_3 = arith.constant 0 : index
    %2 = vector.load %arg6[%c0_2, %c0_3] : memref<36x128xf32, #tpu.memory_space<vmem>>, vector<4x128xf32>
    tpu.vector_store %arg6[%c0_2, %c0_3], %1 {strides = array<i32>} : memref<36x128xf32, #tpu.memory_space<vmem>>, vector<4x128xf32>,
    %c0_4 = arith.constant 0 : index
    %c0_5 = arith.constant 0 : index
    %c1 = arith.constant 1 : index
    %3 = vector.load %arg2[%c0_4, %c0_5, %c1] : memref<1x4x128xf32, #tpu.memory_space<vmem>>, vector<1x4x127xf32>
    %4 = vector.shape_cast %3 : vector<1x4x127xf32> to vector<4x127xf32>
    %c4 = arith.constant 4 : index
    %c0_6 = arith.constant 0 : index
    %5 = vector.load %arg6[%c4, %c0_6] : memref<36x128xf32, #tpu.memory_space<vmem>>, vector<4x127xf32>
    tpu.vector_store %arg6[%c4, %c0_6], %4 {strides = array<i32>} : memref<36x128xf32, #tpu.memory_space<vmem>>, vector<4x127xf32>,
    %c0_7 = arith.constant 0 : index
    %c0_8 = arith.constant 0 : index
    %c0_9 = arith.constant 0 : index
    %6 = vector.load %arg3[%c0_7, %c0_8, %c0_9] : memref<1x4x128xf32, #tpu.memory_space<vmem>>, vector<1x4x1xf32>
    %7 = vector.shape_cast %6 : vector<1x4x1xf32> to vector<4x1xf32>
    %c4_10 = arith.constant 4 : index
    %c127 = arith.constant 127 : index
    %8 = vector.load %arg6[%c4_10, %c127] : memref<36x128xf32, #tpu.memory_space<vmem>>, vector<4x1xf32>
    tpu.vector_store %arg6[%c4_10, %c127], %7 {strides = array<i32>} : memref<36x128xf32, #tpu.memory_space<vmem>>, vector<4x1xf32>,
    %c0_11 = arith.constant 0 : index
    %c0_12 = arith.constant 0 : index
    %c2 = arith.constant 2 : index
    %9 = vector.load %arg2[%c0_11, %c0_12, %c2] : memref<1x4x128xf32, #tpu.memory_space<vmem>>, vector<1x4x126xf32>
    %10 = vector.shape_cast %9 : vector<1x4x126xf32> to vector<4x126xf32>
    %c8 = arith.constant 8 : index
    %c0_13 = arith.constant 0 : index
    %11 = vector.load %arg6[%c8, %c0_13] : memref<36x128xf32, #tpu.memory_space<vmem>>, vector<4x126xf32>
    tpu.vector_store %arg6[%c8, %c0_13], %10 {strides = array<i32>} : memref<36x128xf32, #tpu.memory_space<vmem>>, vector<4x126xf32>,
    %c0_14 = arith.constant 0 : index
    %c0_15 = arith.constant 0 : index
    %c0_16 = arith.constant 0 : index
    %12 = vector.load %arg3[%c0_14, %c0_15, %c0_16] : memref<1x4x128xf32, #tpu.memory_space<vmem>>, vector<1x4x2xf32>
    %13 = vector.shape_cast %12 : vector<1x4x2xf32> to vector<4x2xf32>
    %c8_17 = arith.constant 8 : index
    %c126 = arith.constant 126 : index
    %14 = vector.load %arg6[%c8_17, %c126] : memref<36x128xf32, #tpu.memory_space<vmem>>, vector<4x2xf32>
    tpu.vector_store %arg6[%c8_17, %c126], %13 {strides = array<i32>} : memref<36x128xf32, #tpu.memory_space<vmem>>, vector<4x2xf32>,
    %c0_18 = arith.constant 0 : index
    %c0_19 = arith.constant 0 : index
    %c3 = arith.constant 3 : index
    %15 = vector.load %arg2[%c0_18, %c0_19, %c3] : memref<1x4x128xf32, #tpu.memory_space<vmem>>, vector<1x4x125xf32>
    %16 = vector.shape_cast %15 : vector<1x4x125xf32> to vector<4x125xf32>
    %c12 = arith.constant 12 : index
    %c0_20 = arith.constant 0 : index
    %17 = vector.load %arg6[%c12, %c0_20] : memref<36x128xf32, #tpu.memory_space<vmem>>, vector<4x125xf32>
    tpu.vector_store %arg6[%c12, %c0_20], %16 {strides = array<i32>} : memref<36x128xf32, #tpu.memory_space<vmem>>, vector<4x125xf32>,
    %c0_21 = arith.constant 0 : index
    %c0_22 = arith.constant 0 : index
    %c0_23 = arith.constant 0 : index
    %18 = vector.load %arg3[%c0_21, %c0_22, %c0_23] : memref<1x4x128xf32, #tpu.memory_space<vmem>>, vector<1x4x3xf32>
    %19 = vector.shape_cast %18 : vector<1x4x3xf32> to vector<4x3xf32>
    %c12_24 = arith.constant 12 : index
    %c125 = arith.constant 125 : index
    %20 = vector.load %arg6[%c12_24, %c125] : memref<36x128xf32, #tpu.memory_space<vmem>>, vector<4x3xf32>
    tpu.vector_store %arg6[%c12_24, %c125], %19 {strides = array<i32>} : memref<36x128xf32, #tpu.memory_space<vmem>>, vector<4x3xf32>,
    %c0_25 = arith.constant 0 : index
    %c0_26 = arith.constant 0 : index
    %c4_27 = arith.constant 4 : index
    %21 = vector.load %arg2[%c0_25, %c0_26, %c4_27] : memref<1x4x128xf32, #tpu.memory_space<vmem>>, vector<1x4x124xf32>
    %22 = vector.shape_cast %21 : vector<1x4x124xf32> to vector<4x124xf32>
    %c16 = arith.constant 16 : index
    %c0_28 = arith.constant 0 : index
    %23 = vector.load %arg6[%c16, %c0_28] : memref<36x128xf32, #tpu.memory_space<vmem>>, vector<4x124xf32>
    tpu.vector_store %arg6[%c16, %c0_28], %22 {strides = array<i32>} : memref<36x128xf32, #tpu.memory_space<vmem>>, vector<4x124xf32>,
    %c0_29 = arith.constant 0 : index
    %c0_30 = arith.constant 0 : index
    %c0_31 = arith.constant 0 : index
    %24 = vector.load %arg3[%c0_29, %c0_30, %c0_31] : memref<1x4x128xf32, #tpu.memory_space<vmem>>, vector<1x4x4xf32>
    %25 = vector.shape_cast %24 : vector<1x4x4xf32> to vector<4x4xf32>
    %c16_32 = arith.constant 16 : index
    %c124 = arith.constant 124 : index
    %26 = vector.load %arg6[%c16_32, %c124] : memref<36x128xf32, #tpu.memory_space<vmem>>, vector<4x4xf32>
    tpu.vector_store %arg6[%c16_32, %c124], %25 {strides = array<i32>} : memref<36x128xf32, #tpu.memory_space<vmem>>, vector<4x4xf32>,
    %c0_33 = arith.constant 0 : index
    %c0_34 = arith.constant 0 : index
    %c5 = arith.constant 5 : index
    %27 = vector.load %arg2[%c0_33, %c0_34, %c5] : memref<1x4x128xf32, #tpu.memory_space<vmem>>, vector<1x4x123xf32>
    %28 = vector.shape_cast %27 : vector<1x4x123xf32> to vector<4x123xf32>
    %c20 = arith.constant 20 : index
    %c0_35 = arith.constant 0 : index
    %29 = vector.load %arg6[%c20, %c0_35] : memref<36x128xf32, #tpu.memory_space<vmem>>, vector<4x123xf32>
    tpu.vector_store %arg6[%c20, %c0_35], %28 {strides = array<i32>} : memref<36x128xf32, #tpu.memory_space<vmem>>, vector<4x123xf32>,
    %c0_36 = arith.constant 0 : index
    %c0_37 = arith.constant 0 : index
    %c0_38 = arith.constant 0 : index
    %30 = vector.load %arg3[%c0_36, %c0_37, %c0_38] : memref<1x4x128xf32, #tpu.memory_space<vmem>>, vector<1x4x5xf32>
    %31 = vector.shape_cast %30 : vector<1x4x5xf32> to vector<4x5xf32>
    %c20_39 = arith.constant 20 : index
    %c123 = arith.constant 123 : index
    %32 = vector.load %arg6[%c20_39, %c123] : memref<36x128xf32, #tpu.memory_space<vmem>>, vector<4x5xf32>
    tpu.vector_store %arg6[%c20_39, %c123], %31 {strides = array<i32>} : memref<36x128xf32, #tpu.memory_space<vmem>>, vector<4x5xf32>,
    %c0_40 = arith.constant 0 : index
    %c0_41 = arith.constant 0 : index
    %c6 = arith.constant 6 : index
    %33 = vector.load %arg2[%c0_40, %c0_41, %c6] : memref<1x4x128xf32, #tpu.memory_space<vmem>>, vector<1x4x122xf32>
    %34 = vector.shape_cast %33 : vector<1x4x122xf32> to vector<4x122xf32>
    %c24 = arith.constant 24 : index
    %c0_42 = arith.constant 0 : index
    %35 = vector.load %arg6[%c24, %c0_42] : memref<36x128xf32, #tpu.memory_space<vmem>>, vector<4x122xf32>
    tpu.vector_store %arg6[%c24, %c0_42], %34 {strides = array<i32>} : memref<36x128xf32, #tpu.memory_space<vmem>>, vector<4x122xf32>,
    %c0_43 = arith.constant 0 : index
    %c0_44 = arith.constant 0 : index
    %c0_45 = arith.constant 0 : index
    %36 = vector.load %arg3[%c0_43, %c0_44, %c0_45] : memref<1x4x128xf32, #tpu.memory_space<vmem>>, vector<1x4x6xf32>
    %37 = vector.shape_cast %36 : vector<1x4x6xf32> to vector<4x6xf32>
    %c24_46 = arith.constant 24 : index
    %c122 = arith.constant 122 : index
    %38 = vector.load %arg6[%c24_46, %c122] : memref<36x128xf32, #tpu.memory_space<vmem>>, vector<4x6xf32>
    tpu.vector_store %arg6[%c24_46, %c122], %37 {strides = array<i32>} : memref<36x128xf32, #tpu.memory_space<vmem>>, vector<4x6xf32>,
    %c0_47 = arith.constant 0 : index
    %c0_48 = arith.constant 0 : index
    %c7 = arith.constant 7 : index
    %39 = vector.load %arg2[%c0_47, %c0_48, %c7] : memref<1x4x128xf32, #tpu.memory_space<vmem>>, vector<1x4x121xf32>
    %40 = vector.shape_cast %39 : vector<1x4x121xf32> to vector<4x121xf32>
    %c28 = arith.constant 28 : index
    %c0_49 = arith.constant 0 : index
    %41 = vector.load %arg6[%c28, %c0_49] : memref<36x128xf32, #tpu.memory_space<vmem>>, vector<4x121xf32>
    tpu.vector_store %arg6[%c28, %c0_49], %40 {strides = array<i32>} : memref<36x128xf32, #tpu.memory_space<vmem>>, vector<4x121xf32>,
    %c0_50 = arith.constant 0 : index
    %c0_51 = arith.constant 0 : index
    %c0_52 = arith.constant 0 : index
    %42 = vector.load %arg3[%c0_50, %c0_51, %c0_52] : memref<1x4x128xf32, #tpu.memory_space<vmem>>, vector<1x4x7xf32>
    %43 = vector.shape_cast %42 : vector<1x4x7xf32> to vector<4x7xf32>
    %c28_53 = arith.constant 28 : index
    %c121 = arith.constant 121 : index
    %44 = vector.load %arg6[%c28_53, %c121] : memref<36x128xf32, #tpu.memory_space<vmem>>, vector<4x7xf32>
    tpu.vector_store %arg6[%c28_53, %c121], %43 {strides = array<i32>} : memref<36x128xf32, #tpu.memory_space<vmem>>, vector<4x7xf32>,
    %c0_54 = arith.constant 0 : index
    %c0_55 = arith.constant 0 : index
    %c8_56 = arith.constant 8 : index
    %45 = vector.load %arg2[%c0_54, %c0_55, %c8_56] : memref<1x4x128xf32, #tpu.memory_space<vmem>>, vector<1x4x120xf32>
    %46 = vector.shape_cast %45 : vector<1x4x120xf32> to vector<4x120xf32>
    %c32 = arith.constant 32 : index
    %c0_57 = arith.constant 0 : index
    %47 = vector.load %arg6[%c32, %c0_57] : memref<36x128xf32, #tpu.memory_space<vmem>>, vector<4x120xf32>
    tpu.vector_store %arg6[%c32, %c0_57], %46 {strides = array<i32>} : memref<36x128xf32, #tpu.memory_space<vmem>>, vector<4x120xf32>,
    %c0_58 = arith.constant 0 : index
    %c0_59 = arith.constant 0 : index
    %c0_60 = arith.constant 0 : index
    %48 = vector.load %arg3[%c0_58, %c0_59, %c0_60] : memref<1x4x128xf32, #tpu.memory_space<vmem>>, vector<1x4x8xf32>
    %49 = vector.shape_cast %48 : vector<1x4x8xf32> to vector<4x8xf32>
    %c32_61 = arith.constant 32 : index
    %c120 = arith.constant 120 : index
    %50 = vector.load %arg6[%c32_61, %c120] : memref<36x128xf32, #tpu.memory_space<vmem>>, vector<4x8xf32>
    tpu.vector_store %arg6[%c32_61, %c120], %49 {strides = array<i32>} : memref<36x128xf32, #tpu.memory_space<vmem>>, vector<4x8xf32>,
    %c0_62 = arith.constant 0 : index
    %c0_63 = arith.constant 0 : index
    %51 = vector.load %arg4[%c0_62, %c0_63] : memref<8x36xf32, #tpu.memory_space<vmem>>, vector<8x36xf32>
    %c0_64 = arith.constant 0 : index
    %c0_65 = arith.constant 0 : index
    %52 = vector.load %arg6[%c0_64, %c0_65] : memref<36x128xf32, #tpu.memory_space<vmem>>, vector<36x128xf32>
    %cst = arith.constant dense<0.000000e+00> : vector<8x128xf32>
    %53 = tpu.matmul %51, %52, %cst {dimension_numbers = #tpu.dot_dimension_numbers<[1], [0], [0], [1], [0, 0, 1, 1], [], []>} : vector<8x36xf32>, vector<36x128xf32>, vector<8x128xf32> -> vector<8x128xf32>
    %c0_66 = arith.constant 0 : index
    %c0_67 = arith.constant 0 : index
    %c0_68 = arith.constant 0 : index
    %54 = vector.load %arg5[%c0_66, %c0_67, %c0_68] : memref<1x8x128xf32, #tpu.memory_space<vmem>>, vector<1x8x128xf32>
    %55 = vector.shape_cast %54 : vector<1x8x128xf32> to vector<8x128xf32>
    %56 = vector.shape_cast %53 : vector<8x128xf32> to vector<1x8x128xf32>
    tpu.vector_store %arg5[%c0_66, %c0_67, %c0_68], %56 {strides = array<i32>} : memref<1x8x128xf32, #tpu.memory_space<vmem>>, vector<1x8x128xf32>,
    return
  }
  func.func @transform_0(%arg0: i32, %arg1: i32) -> (i32, i32, i32) {
    %c0_i32 = arith.constant 0 : i32
    %c0_i32_0 = arith.constant 0 : i32
    return %arg0, %c0_i32, %arg1 : i32, i32, i32
  }
  func.func @transform_1(%arg0: i32, %arg1: i32) -> (i32, i32, i32) {
    %c1_i32 = arith.constant 1 : i32
    %0 = arith.addi %arg1, %c1_i32 : i32
    %c1_i32_0 = arith.constant 1 : i32
    %1 = arith.muli %0, %c1_i32_0 : i32
    %c0_i32 = arith.constant 0 : i32
    %c0_i32_1 = arith.constant 0 : i32
    return %arg0, %c0_i32, %1 : i32, i32, i32
  }
  func.func @transform_2(%arg0: i32, %arg1: i32) -> (i32, i32) {
    %c0_i32 = arith.constant 0 : i32
    %c0_i32_0 = arith.constant 0 : i32
    %c0_i32_1 = arith.constant 0 : i32
    return %c0_i32, %c0_i32_0 : i32, i32
  }
  func.func @transform_3(%arg0: i32, %arg1: i32) -> (i32, i32, i32) {
    %c0_i32 = arith.constant 0 : i32
    %c0_i32_0 = arith.constant 0 : i32
    return %arg0, %c0_i32, %arg1 : i32, i32, i32
  }
}

</mosaic_0001>

<bundles_post_ra>
// kernel: tpu_custom_call.1
= control target key start
LH: loop header
LB: loop body
LE: loop exit
PB: predicated region body
PF: predicated region fallthrough
CT: control target
= control target key end

     0   :  { %s1220_s0 = inlined_call_operand.hbm [shape: f32[2,4,256], index: 0, kind: input, shape index: {}]   ;;  %s1221_s1 = inlined_call_operand.hbm [shape: f32[2,4,256], index: 1, kind: input, shape index: {}]   ;;  %s1222_s2 = inlined_call_operand.hbm [shape: f32[8,36], index: 2, kind: input, shape index: {}]   ;;  %s1223_s3 = inlined_call_operand.hbm [shape: f32[2,8,128], index: 3, kind: output, shape index: {}]  }
   0x1   :  { %1229 = sst [smem:[#allocation15_spill]] %s1222_s2 }
   0x2   :  { %8 = vsyncpa [#allocation4], 0 }
   0x3   :  { %10 = vsyncpa [#allocation4 + $0x1], 0 }
   0x4   :  { %11 = vsyncpa [#allocation7], 0 }
   0x5   :  { %13 = vsyncpa [#allocation7 + $0x1], 0 }
   0x6   :  { %14 = vsyncpa [#allocation5], 0 }
   0x7   :  { %16 = vsyncpa [#allocation5 + $0x1], 0  ;;  %s945_s12 = smov 0   ;;  %s947_s13 = smov 0  }
   0x8   :  { %s949_s14 = smov 0   ;;  %s951_s15 = smov 0  }
   0x9   :  { %s953_s16 = smov 0   ;;  %s955_s17 = smov 0  }
   0xa LB: > { %s976_s18 = sadd.s32 4294967295, %s908_s17   ;;  %s592_s19 = sadd.s32 4294967294, %s908_s17   ;;  %s908_s17 = sphi %s955_s17, %s22_s17   ;;  %s904_s16 = sphi %s953_s16, %s1253_s16   ;;  %s900_s15 = sphi %s951_s15, %s1252_s15   ;;  %s896_s14 = sphi %s949_s14, %s1251_s14   ;;  %s892_s13 = sphi %s947_s13, %s1250_s13   ;;  %s888_s12 = sphi %s945_s12, %s1249_s12  }
   0xb   : > { %p56_p0 = scmp.ne.s32.totalorder %s892_s13, %s888_s12  ;;  %p1224_p1 = scmp.eq.s32.totalorder %s976_s18, 0 }
   0xc   : > { %p139_p3 = scmp.eq.s32.totalorder %s592_s19, 1  ;;  %p593_p5 = scmp.ge.s32.totalorder %s908_s17, 1 }
   0xd   : > { %p985_p4 = por %p1224_p1, %p56_p0  ;;  %p146_p7 = scmp.lt.s32.totalorder %s908_s17, 3 }
   0xe   : > { %p990_p6 = por %p139_p3, %p56_p0  ;;  %s910_s23 = smov [#allocation8]  }
   0xf   : > { %s1230_s20 = scalar_select %p985_p4, 1, 0 }
  0x10   : > { %s1231_s21 = scalar_select %p990_p6, 1, 0 }
  0x11   : > { %p995_p8 = pnand %p593_p5, %p146_p7  ;;  %s159_s24 = sshll.u32 %s910_s23, 4  ;;  %s160_s24 = int_to_ptr.vmem [resolvable:$true] %s159_s24 }
  0x12   : > { %s34_s26 = sadd.s32 1, %s904_s16  ;;  %s43_s27 = sadd.s32 1, %s896_s14 }
  0x13   : > { %s1232_s22 = scalar_select %p995_p8, 1, 0 }
  0x14   : > { %p650_p10 = pneg %p995_p8  ;;  %p1010_p12 = scmp.ge.s32.totalorder %s34_s26, 2 }
  0x15   : > { %s1235_s2 = sld [smem:[#allocation15_spill]] }
  0x16   : > { %p1004_p11 = pnand %p650_p10, %p1224_p1 }
  0x17   : > { %s1234_s28 = scalar_select %p1010_p12, 1, 0 }
  0x18   : > { %p731_p0 = pneg %p1004_p11 }
  0x1b   : > { %s729_s4 = scalar_lea.hbm %s1235_s2, 128 }
  0x1c   : > { %p730_p13 = scmp.ne.s32.totalorder %s1235_s2, %s729_s4  ;;  %p736_p7 = scmp.lt.u32.totalorder %s729_s4, %s1235_s2 }
  0x1e   : > { %p732_p3 = pnand %p731_p0, %p730_p13 }
  0x20   : > { %p733_p5 = pneg %p732_p3 }
  0x22   : > { %p738_p10 = pnand %p736_p7, %p733_p5 }
  0x24   : > { %741 = shalt.err (!%p738_p10)
}
  0x25   : > { %s742_s9 = scalar_lea.vmem %s160_s24, 128  ;;  %p750_p6 = scmp.lt.s32.totalorder %s160_s24, %s160_s24 }
  0x26   : > { %p743_p9 = scmp.ne.s32.totalorder %s160_s24, %s742_s9  ;;  %p751_p4 = scmp.lt.s32.totalorder %s742_s9, %s742_s9 }
  0x28   : > { %p745_p1 = pnand %p743_p9, %p731_p0  ;;  %p752_p8 = por %p751_p4, %p750_p6 }
  0x2a   : > { %p746_p2 = pneg %p745_p1 }
  0x2c   : > { %p753_p12 = pnand %p752_p8, %p746_p2 }
  0x2e   : > { %756 = shalt.err (!%p753_p12)
}
  0x2f   : > { %653 = dma.hbm_to_vmem [thread:$0]  (!%p1004_p11), %s1235_s2, 128, %s160_s24, [#allocation7]  }
  0x30   : > { %p1236_p1 = scmp.ne.s32.totalorder %s1234_s28, 0  ;;  %p50_p2 = scmp.ne.s32.totalorder %s896_s14, %s892_s13 }
  0x31   : > { %p51_p4 = scmp.eq.s32.totalorder %s908_s17, 0  ;;  %p666_p6 = scmp.lt.s32.totalorder %s908_s17, 2 }
  0x32   : > { %s1255_s26 = smov (%p1236_p1, %s34_s26), 0  ;;  %p1238_p12 = scmp.eq.s32.totalorder %s976_s18, 1 }
  0x33   : > { %1237 = sst [smem:[#allocation14_spill]] %s1255_s26  ;;  %s38_s19 = ssub.s32 %s904_s16, %s1255_s26 }
  0x34   : > { %p41_p8 = scmp.eq.s32.totalorder %s38_s19, 0  ;;  %p52_p9 = por %p51_p4, %p50_p2 }
  0x35   : > { %p1042_p13 = por %p1238_p12, %p50_p2  ;;  %s170_s25 = sand.u32 1, %s896_s14  }
  0x36   : > { %s1050_s29 = scalar_select %p41_p8, %s896_s14, %s43_s27  }
  0x37   : > { %s1239_s23 = scalar_select %p1042_p13, 1, 0 }
  0x38   : > { %s1052_s24 = sshll.u32 %s170_s25, 2  ;;  %s613_s28 = sshll.u32 %s904_s16, 7 }
  0x39   : > { %s1058_s5 = scalar_lea.hbm %s1220_s0, %s613_s28  ;;  %s174_s6 = scalar_lea.vmem [#allocation3], %s1052_s24 }
  0x3a   : > { %s183_s7 = sshll.u32 %s174_s6, 4  ;;  %p1063_p11 = pnand %p666_p6, %p52_p9  ;;  %s1061_s7 = int_to_ptr.vmem [resolvable:$true] %s183_s7 }
  0x3b   : > { %s1070_s10 = scalar_lea.hbm %s1221_s1, %s613_s28  ;;  %s190_s11 = sand.u32 1, %s908_s17  }
  0x3c   : > { %s171_s19 = scalar_lea.sflag [#allocation4], %s170_s25  ;;  %s757_s30 = scalar_lea.hbm %s1058_s5, 64 }
  0x3d   : > { %p758_p0 = scmp.ne.s32.totalorder %s1058_s5, %s757_s30  ;;  %p759_p3 = pneg %p1063_p11 }
  0x3e   : > { %s762_s2 = scalar_lea.hbm %s1220_s0, 256  ;;  %p763_p10 = scmp.lt.u32.totalorder %s1058_s5, %s1220_s0 }
  0x3f   : > { %p760_p5 = pnand %p759_p3, %p758_p0  ;;  %p764_p1 = scmp.lt.u32.totalorder %s762_s2, %s757_s30 }
  0x40   : > { %p766_p4 = scmp.lt.u32.totalorder %s757_s30, %s1058_s5 }
  0x41   : > { %p761_p7 = pneg %p760_p5  ;;  %p765_p2 = por %p764_p1, %p763_p10 }
  0x43   : > { %p767_p6 = por %p766_p4, %p765_p2 }
  0x45   : > { %p768_p8 = pnand %p767_p6, %p761_p7 }
  0x47   : > { %771 = shalt.err (!%p768_p8)
}
  0x48   : > { %s772_s25 = scalar_lea.vmem %s1061_s7, 64  ;;  %s911_s28 = smov [#allocation3]  }
  0x49   : > { %p773_p9 = scmp.ne.s32.totalorder %s1061_s7, %s772_s25  ;;  %s777_s9 = sshll.u32 %s911_s28, 4  ;;  %s778_s9 = int_to_ptr.vmem [resolvable:$false] %s777_s9 }
  0x4a   : > { %s779_s26 = scalar_lea.vmem %s778_s9, 128  ;;  %p780_p5 = scmp.lt.s32.totalorder %s1061_s7, %s778_s9 }
  0x4b   : > { %p775_p12 = pnand %p773_p9, %p759_p3  ;;  %p781_p10 = scmp.lt.s32.totalorder %s779_s26, %s772_s25 }
  0x4d   : > { %p776_p0 = pneg %p775_p12  ;;  %p782_p1 = por %p781_p10, %p780_p5 }
  0x4f   : > { %p783_p2 = pnand %p782_p1, %p776_p0 }
  0x51   : > { %786 = shalt.err (!%p783_p2)
}
  0x52   : > { %657 = dma.hbm_to_vmem [thread:$0]  (!%p1063_p11), %s1058_s5, 64, %s1061_s7, %s171_s19  }
  0x53   : > { %s1099_s2 = scalar_lea.hbm %s1070_s10, 64  ;;  %s194_s30 = scalar_lea.vmem [#allocation6], %s1052_s24 }
  0x54   : > { %s204_s4 = sshll.u32 %s194_s30, 4  ;;  %s191_s6 = scalar_lea.sflag [#allocation7], %s190_s11  ;;  %s205_s4 = int_to_ptr.vmem [resolvable:$true] %s204_s4 }
  0x55   : > { %s817_s8 = scalar_lea.hbm %s1070_s10, 128  ;;  %s792_s5 = scalar_lea.hbm %s1221_s1, 256 }
  0x56   : > { %p788_p7 = scmp.ne.s32.totalorder %s1099_s2, %s817_s8  ;;  %p793_p8 = scmp.lt.u32.totalorder %s1099_s2, %s1221_s1 }
  0x57   : > { %p794_p9 = scmp.lt.u32.totalorder %s792_s5, %s817_s8  ;;  %p796_p0 = scmp.lt.u32.totalorder %s817_s8, %s1099_s2 }
  0x58   : > { %p790_p4 = pnand %p788_p7, %p759_p3 }
  0x59   : > { %p795_p12 = por %p794_p9, %p793_p8 }
  0x5a   : > { %p791_p6 = pneg %p790_p4 }
  0x5b   : > { %p797_p5 = por %p796_p0, %p795_p12 }
  0x5d   : > { %p798_p10 = pnand %p797_p5, %p791_p6 }
  0x5f   : > { %801 = shalt.err (!%p798_p10)
}
  0x60   : > { %s802_s24 = scalar_lea.vmem %s205_s4, 64  ;;  %s912_s10 = smov [#allocation6]  }
  0x61   : > { %p803_p1 = scmp.ne.s32.totalorder %s205_s4, %s802_s24  ;;  %s807_s11 = sshll.u32 %s912_s10, 4  ;;  %s808_s11 = int_to_ptr.vmem [resolvable:$false] %s807_s11 }
  0x62   : > { %s809_s9 = scalar_lea.vmem %s808_s11, 128  ;;  %p810_p4 = scmp.lt.s32.totalorder %s205_s4, %s808_s11 }
  0x63   : > { %p805_p2 = pnand %p803_p1, %p759_p3  ;;  %p811_p13 = scmp.lt.s32.totalorder %s809_s9, %s802_s24 }
  0x65   : > { %p806_p7 = pneg %p805_p2  ;;  %p812_p8 = por %p811_p13, %p810_p4 }
  0x67   : > { %p813_p9 = pnand %p812_p8, %p806_p7 }
  0x69   : > { %816 = shalt.err (!%p813_p9)
}
  0x6a   : > { %660 = dma.hbm_to_vmem [thread:$0]  (!%p1063_p11), %s1099_s2, 64, %s205_s4, %s191_s6  }
  0x6b   : > { %p1241_p6 = scmp.ne.s32.totalorder %s1232_s22, 0 }
  0x6c   : > { %s1126_s26 = sand.u32 (!%p1241_p6), 1, %s892_s13   ;;  %p1242_p13 = scmp.ne.s32.totalorder (!%p1241_p6), %s1230_s20, 0 }
  0x6d   : > { %213 = sbr.rel (%p1241_p6) target bundleno = 505 (0x1f9), region = 32  ;;  %s603_s30 = sshll.u32 (!%p1241_p6), %s1126_s26, 2 }
  0x6e   : > { %s216_s8 = scalar_lea.sflag (!%p1241_p6), [#allocation4], %s1126_s26  ;;  %s1130_s25 = scalar_lea.vmem (!%p1241_p6), [#allocation3], %s603_s30 }
  0x74   : > { %871 = dma.done.wait (%p1242_p13), %s216_s8, 64  }
  0x75   : > { %873 = vsyncadd (%p1242_p13), %s216_s8, 4294967232  ;;  %s224_s27 = sand.u32 1, %s976_s18   ;;  %s1137_s2 = scalar_lea.vmem [#allocation6], %s603_s30 }
  0x76   : > { %s225_s22 = scalar_lea.sflag [#allocation7], %s224_s27 }
  0x77   : > { %875 = dma.done.wait (%p1242_p13), %s225_s22, 64  }
  0x78   : > { %877 = vsyncadd (%p1242_p13), %s225_s22, 4294967232  ;;  %p1243_p11 = scmp.eq.s32.totalorder %s976_s18, 0 }
  0x7a   : > { %879 = dma.done.wait (%p1243_p11), [#allocation7], 128   ;;  %p1244_p3 = pmov %p1243_p11 }
  0x7b   : > { %v291_v0 = vld [vmem:[%s1130_s25] sm:$0xf]  ;;  %s913_s4 = smov 125   ;;  %s914_s20 = smov 127   ;;  %v270_v2 = vld [vmem:[%s1137_s2] sm:$0xf] }
  0x7c   : > { %881 = vsyncadd (%p1244_p3), [#allocation7], 4294967168  ;;  %v263_v1 = vld [vmem:[%s1130_s25] sm:$0xf]  ;;  %293 = vrot.lane.b32.xlu1 %v291_v0, %s913_s4  ;;  %s915_s18 = smov 126   ;;  %v916_v6 = vmov 0.0|0.0  }
  0x7d   : > { %265 = vrot.lane.b32.xlu0 %v263_v1, %s914_s20  ;;  %v277_v3 = vld [vmem:[%s1130_s25] sm:$0xf]  ;;  %v298_v4 = vld [vmem:[%s1137_s2] sm:$0xf]  ;;  %634 = vmatprep.subr.bf16.mxu0 %v916_v6  ;;  %s917_s6 = smov 123   ;;  %s918_s28 = smov 124  }
  0x7e   : > { %v284_v5 = vld [vmem:[%s1137_s2] sm:$0xf]  ;;  %v261_v7 = vld [vmem:[%s1130_s25] sm:$0xf]  ;;  %s919_s5 = smov 121   ;;  %s920_s7 = smov 122  }
  0x7f   : > { %262 = vst [vmem:[#allocation2] sm:$0xf] %v261_v7  ;;  %v319_v8 = vld [vmem:[%s1130_s25] sm:$0xf]  ;;  %v326_v12 = vld [vmem:[%s1137_s2] sm:$0xf] }
  0x80   : > { %272 = vrot.lane.b32.xlu1 %v270_v2, %s914_s20  ;;  %v305_v9 = vld [vmem:[%s1130_s25] sm:$0xf]  ;;  %v312_v13 = vld [vmem:[%s1137_s2] sm:$0xf]  ;;  %vm921_vm0 = vmmov 0   ;;  %v922_v18 = vmov 0.0  }
  0x81   : > { %279 = vrot.lane.b32.xlu0 %v277_v3, %s915_s18  ;;  %v347_v10 = vld [vmem:[%s1130_s25] sm:$0xf]  ;;  %v354_v14 = vld [vmem:[%s1137_s2] sm:$0xf]  ;;  %631 = vmatprep.mubr.msk.f32.mxu0 %vm921_vm0, %v922_v18  ;;  %s923_s19 = smov 120   ;;  %vm296_vm1 = vcmask 1018880  }
  0x82   : > { %v333_v11 = vld [vmem:[%s1130_s25] sm:$0xf]  ;;  %v340_v15 = vld [vmem:[%s1137_s2] sm:$0xf]  ;;  %vm268_vm2 = vcmask 1035264   ;;  %vm275_vm3 = vcmask 1044472  }
  0x83   : > { %v361_v16 = vld [vmem:[%s1130_s25] sm:$0xf]  ;;  %v368_v17 = vld [vmem:[%s1137_s2] sm:$0xf]  ;;  %vm282_vm4 = vcmask 1027072   ;;  %vm303_vm5 = vcmask 1044456  }
  0x84   : > { %300 = vrot.lane.b32.xlu1 %v298_v4, %s913_s4  ;;  %vm289_vm6 = vcmask 1044464   ;;  %vm324_vm7 = vcmask 1002496   ;;  %vm310_vm8 = vcmask 1010688   ;;  %vm352_vm9 = vcmask 986112   ;;  %v375_v42 = vld [vmem:[#allocation8] sm:$0xff]  ;;  %s606_s24 = sshll.u32 %s1126_s26, 3 }
  0x85   : > { %286 = vrot.lane.b32.xlu0 %v284_v5, %s915_s18  ;;  %vm338_vm10 = vcmask 994304   ;;  %vm331_vm11 = vcmask 1044440   ;;  %vm317_vm12 = vcmask 1044448   ;;  %vm359_vm13 = vcmask 1044424   ;;  %s259_s10 = scalar_lea.vmem [#allocation9], %s606_s24  ;;  %s610_s9 = sshll.u32 %s900_s15, 7 }
  0x86   : > { %vm345_vm14 = vcmask 1044432   ;;  %vm366_vm15 = vcmask 977920   ;;  %vm373_vm0 = vcmask 1044416   ;;  %s475_s11 = sshll.u32 %s259_s10, 4  ;;  %s1173_s25 = scalar_lea.hbm %s1223_s3, %s610_s9  ;;  %s1168_s11 = int_to_ptr.vmem [resolvable:$true] %s475_s11 }
  0x87   : > { %s461_s27 = scalar_lea.sflag [#allocation5], %s1126_s26  ;;  %s818_s22 = scalar_lea.vmem %s1168_s11, 128 }
  0x88   : > { %321 = vrot.lane.b32.xlu1 %v319_v8, %s917_s6  ;;  %p819_p12 = scmp.ne.s32.totalorder %s1168_s11, %s818_s22  ;;  %p1245_p0 = scmp.ne.s32.totalorder %s1239_s23, 0 }
  0x89   : > { %307 = vrot.lane.b32.xlu0 %v305_v9, %s918_s28  ;;  %s924_s15 = smov [#allocation9]  }
  0x8a   : > { %p820_p5 = pnand %p819_p12, %p1245_p0  ;;  %s822_s2 = sshll.u32 %s924_s15, 4  ;;  %s823_s2 = int_to_ptr.vmem [resolvable:$false] %s822_s2 }
  0x8b   : > { %s824_s4 = scalar_lea.vmem %s823_s2, 256  ;;  %p825_p1 = scmp.lt.s32.totalorder %s1168_s11, %s823_s2 }
  0x8c   : > { %349 = vrot.lane.b32.xlu1 %v347_v10, %s919_s5  ;;  %p821_p10 = pneg %p820_p5  ;;  %p826_p2 = scmp.lt.s32.totalorder %s824_s4, %s818_s22 }
  0x8d   : > { %335 = vrot.lane.b32.xlu0 %v333_v11, %s920_s7 }
  0x8e   : > { %p827_p7 = por %p826_p2, %p825_p1 }
  0x90   : > { %328 = vrot.lane.b32.xlu1 %v326_v12, %s917_s6  ;;  %p828_p4 = pnand %p827_p7, %p821_p10 }
  0x91   : > { %314 = vrot.lane.b32.xlu0 %v312_v13, %s918_s28 }
  0x94   : > { %356 = vrot.lane.b32.xlu1 %v354_v14, %s919_s5 }
  0x95   : > { %342 = vrot.lane.b32.xlu0 %v340_v15, %s920_s7 }
  0x98   : > { %370 = vrot.lane.b32.xlu1 %v368_v17, %s923_s19 }
  0x99   : > { %363 = vrot.lane.b32.xlu0 %v361_v16, %s923_s19 }
  0xee   : > { %v294_v19 = vpop.permute.xlu1 %293 }
  0xef   : > { %v266_v20 = vpop.permute.xlu0 %265  ;;  %297 = vst.msk [vmem:[#allocation2 + $0xc] sm:$0xf] %vm296_vm1, %v294_v19  ;;  %vm385_vm1 = vcmask 1043456  }
  0xf0   : > { %269 = vst.msk [vmem:[#allocation2 + $0x4] sm:$0xf] %vm268_vm2, %v266_v20  ;;  %vm381_vm2 = vcmask 293888  }
  0xf2   : > { %v273_v21 = vpop.permute.xlu1 %272 }
  0xf3   : > { %v280_v22 = vpop.permute.xlu0 %279  ;;  %276 = vst.msk [vmem:[#allocation2 + $0x4] sm:$0xf] %vm275_vm3, %v273_v21 }
  0xf4   : > { %283 = vst.msk [vmem:[#allocation2 + $0x8] sm:$0xf] %vm282_vm4, %v280_v22 }
  0xf6   : > { %v301_v23 = vpop.permute.xlu1 %300 }
  0xf7   : > { %v287_v24 = vpop.permute.xlu0 %286  ;;  %304 = vst.msk [vmem:[#allocation2 + $0xc] sm:$0xf] %vm303_vm5, %v301_v23 }
  0xf8   : > { %290 = vst.msk [vmem:[#allocation2 + $0x8] sm:$0xf] %vm289_vm6, %v287_v24 }
  0xfa   : > { %v322_v25 = vpop.permute.xlu1 %321  ;;  %v376_v29 = vld [vmem:[#allocation2] sm:$0xff] }
  0xfb   : > { %v308_v26 = vpop.permute.xlu0 %307  ;;  %325 = vst.msk [vmem:[#allocation2 + $0x14] sm:$0xf] %vm324_vm7, %v322_v25 }
  0xfc   : > { %311 = vst.msk [vmem:[#allocation2 + $0x10] sm:$0xf] %vm310_vm8, %v308_v26 }
  0xfe   : > { %v350_v27 = vpop.permute.xlu1 %349 }
  0xff   : > { %v336_v28 = vpop.permute.xlu0 %335  ;;  %v377_v30 = vld [vmem:[#allocation2 + $0x8] sm:$0xff]  ;;  %353 = vst.msk [vmem:[#allocation2 + $0x1c] sm:$0xf] %vm352_vm9, %v350_v27 }
 0x100   : > { %339 = vst.msk [vmem:[#allocation2 + $0x18] sm:$0xf] %vm338_vm10, %v336_v28  ;;  %v635_v31 = vpack.c.bf16 %v377_v30, %v376_v29 }
 0x102   : > { %636 = vmatpush3.bf16.msra.mxu0 %v635_v31  ;;  %v329_v32 = vpop.permute.xlu1 %328 }
 0x103   : > { %v315_v33 = vpop.permute.xlu0 %314  ;;  %637 = vmatprep.subr.bf16.mxu0 %v916_v6  ;;  %332 = vst.msk [vmem:[#allocation2 + $0x14] sm:$0xf] %vm331_vm11, %v329_v32 }
 0x104   : > { %318 = vst.msk [vmem:[#allocation2 + $0x10] sm:$0xf] %vm317_vm12, %v315_v33 }
 0x106   : > { %v357_v34 = vpop.permute.xlu1 %356 }
 0x107   : > { %v343_v35 = vpop.permute.xlu0 %342  ;;  %360 = vst.msk [vmem:[#allocation2 + $0x1c] sm:$0xf] %vm359_vm13, %v357_v34 }
 0x108   : > { %346 = vst.msk [vmem:[#allocation2 + $0x18] sm:$0xf] %vm345_vm14, %v343_v35 }
 0x10a   : > { %v371_v37 = vpop.permute.xlu1 %370 }
 0x10b   : > { %v364_v36 = vpop.permute.xlu0 %363  ;;  %v378_v38 = vld [vmem:[#allocation2 + $0x10] sm:$0xff] }
 0x10c   : > { %367 = vst.msk [vmem:[#allocation2 + $0x20] sm:$0xf] %vm366_vm15, %v364_v36 }
 0x10d   : > { %374 = vst.msk [vmem:[#allocation2 + $0x20] sm:$0xf] %vm373_vm0, %v371_v37 }
 0x10f   : > { %v379_v39 = vld [vmem:[#allocation2 + $0x18] sm:$0xff] }
 0x110   : > { %v638_v40 = vpack.c.bf16 %v379_v39, %v378_v38 }
 0x112   : > { %639 = vmatpush3.bf16.msra.mxu0 %v638_v40 }
 0x113   : > { %629 = vmatprep.subr.mxu0 %v922_v18 }
 0x114   : > { %v380_v41 = vld [vmem:[#allocation2 + $0x20] sm:$0xf] }
 0x116   : > { %630 = vmatpush3.msk.msra.mxu0 %vm385_vm1, %v380_v41 }
 0x117   : > { %632 = vmatmul.mubr.msk.f32.vlgmr.msra.gmra.mrb[0].mxu0 %vm381_vm2, %v375_v42 }
 0x1ea   : > { %v455_v43 = vpop.f32.mrb[0].mxu0 }
 0x1eb   : > { %459 = vst [vmem:[%s259_s10] sm:$0xff] %v455_v43  ;;  %v633_v44 = vpop.f32.mrb[1].mxu0 }
 0x1ec   : > { %831 = shalt.err (!%p828_p4)
}
 0x1ed   : > { %s832_s26 = scalar_lea.hbm %s1173_s25, 128  ;;  %s836_s6 = scalar_lea.hbm %s1223_s3, 256 }
 0x1ee   : > { %p833_p8 = scmp.ne.s32.totalorder %s1173_s25, %s832_s26  ;;  %p837_p13 = scmp.lt.u32.totalorder %s1173_s25, %s1223_s3 }
 0x1ef   : > { %p838_p11 = scmp.lt.u32.totalorder %s836_s6, %s832_s26  ;;  %p840_p12 = scmp.lt.u32.totalorder %s832_s26, %s1173_s25 }
 0x1f0   : > { %p834_p9 = pnand %p833_p8, %p1245_p0 }
 0x1f1   : > { %p839_p3 = por %p838_p11, %p837_p13 }
 0x1f2   : > { %p835_p6 = pneg %p834_p9 }
 0x1f3   : > { %p841_p5 = por %p840_p12, %p839_p3 }
 0x1f5   : > { %p842_p10 = pnand %p841_p5, %p835_p6 }
 0x1f7   : > { %845 = shalt.err (!%p842_p10)
}
 0x1f8   : > { %648 = dma.vmem_to_hbm [thread:$0]  (%p1245_p0), %s1168_s11, 128, %s1173_s25, %s461_s27  }
 0x1f9 PF: > { %s487_s7 = sand.u32 1, %s888_s12   ;;  %p1246_p1 = scmp.ne.s32.totalorder %s1231_s21, 0 }
 0x1fa   : > { %p1247_p2 = scmp.ge.s32.totalorder %s908_s17, 2  ;;  %s488_s19 = scalar_lea.sflag [#allocation5], %s487_s7 }
 0x1fc   : > { %p662_p7 = pnand %p1247_p2, %p1246_p1 }
 0x1fe   : > { %883 = dma.done.wait (!%p662_p7), %s488_s19, 128  }
 0x1ff   : > { %885 = vsyncadd (!%p662_p7), %s488_s19, 4294967168  ;;  %s22_s17 = sadd.s32 1, %s908_s17   ;;  %s1248_s23 = sld [smem:[#allocation14_spill]] }
 0x200   : > { %p19_p4 = scmp.ge.s32.totalorder %s22_s17, 4   ;;  %s1249_s12 = smov %s892_s13 }
 0x201   : > { %s1250_s13 = smov %s896_s14  ;;  %s1251_s14 = smov %s1050_s29 }
 0x202   : > { %s1252_s15 = smov %s904_s16  ;;  %21 = sbr.rel (!%p19_p4) target bundleno = 10 (0xa), region = 94 }
 0x205   : > { %s1253_s16 = smov %s1248_s23 }
 0x209   :  { %493 = vsyncpa [#allocation4], 1 }
 0x20a   :  { %495 = vsyncpa [#allocation4 + $0x1], 1 }
 0x20b   :  { %496 = vsyncpa [#allocation7], 1 }
 0x20c   :  { %498 = vsyncpa [#allocation7 + $0x1], 1 }
 0x20d   :  { %499 = vsyncpa [#allocation5], 1 }
 0x20e   :  { %501 = vsyncpa [#allocation5 + $0x1], 1 }

</bundles_post_ra>
